<compile_context>
chip_gen: v5e
topology: v5e:2x2
jax: 0.10.0
libtpu: 0.0.40
codegen_flags: <defaults>
</compile_context>

<pallas_src>
import functools
import math

import jax
import jax.numpy as jnp
from jax import lax
from jax.experimental import pallas as pl
from jax.experimental.pallas import tpu as pltpu


def _sigmoid(x):
    return 1.0 / (1.0 + jnp.exp(-x))


def _silu(x):
    return x * _sigmoid(x)


def _pick_tile(dim, target, base):
    """Largest tile <= target that is a multiple of `base` and divides `dim`;
    falls back to the full dim (a full-extent block is always legal)."""
    if dim <= target:
        return dim
    t = (target // base) * base
    while t >= base:
        if dim % t == 0:
            return t
        t -= base
    return dim


def _pick_head_block(num_heads, chunk_size, budget_bytes=4 << 20):
    """Bound the (hb, cs, cs) f32 intermediates of the SSD chunk math."""
    per_head = chunk_size * chunk_size * 4 * 4
    hb = max(1, min(num_heads, budget_bytes // max(per_head, 1)))
    while num_heads % hb:
        hb -= 1
    return hb


# ---------------- kernel 1: dense projection (in_proj) ----------------
def _matmul_bias_kernel(x_ref, w_ref, b_ref, o_ref, acc_ref):
    @pl.when(pl.program_id(2) == 0)
    def _():
        acc_ref[...] = jnp.zeros_like(acc_ref)

    acc_ref[...] += jnp.dot(x_ref[...], w_ref[...], preferred_element_type=jnp.float32)

    @pl.when(pl.program_id(2) == pl.num_programs(2) - 1)
    def _():
        o_ref[...] = (acc_ref[...] + b_ref[...].astype(jnp.float32)).astype(o_ref.dtype)


def pallas_linear(x, w, b, *, out_dtype, tm=256, tn=256, tk=512):
    M, K = x.shape
    N = w.shape[1]
    tm = _pick_tile(M, tm, 8)
    tn = _pick_tile(N, tn, 128)
    tk = _pick_tile(K, tk, 128)
    return pl.pallas_call(
        _matmul_bias_kernel,
        grid=(M // tm, N // tn, K // tk),
        out_shape=jax.ShapeDtypeStruct((M, N), out_dtype),
        in_specs=[
            pl.BlockSpec((tm, tk), lambda i, j, k: (i, k)),
            pl.BlockSpec((tk, tn), lambda i, j, k: (k, j)),
            pl.BlockSpec((1, tn), lambda i, j, k: (0, j)),
        ],
        out_specs=pl.BlockSpec((tm, tn), lambda i, j, k: (i, j)),
        scratch_shapes=[pltpu.VMEM((tm, tn), jnp.float32)],
        compiler_params=pltpu.CompilerParams(
            dimension_semantics=("parallel", "parallel", "arbitrary")),
    )(x, w, b.reshape(1, N))


# ---------------- kernel 2: depthwise causal conv1d + SiLU ----------------
def _conv_silu_kernel(xp_ref, w_ref, b_ref, o_ref, *, kernel_size, seq_len):
    acc = jnp.zeros(o_ref.shape, jnp.float32)
    # K is small (typically 4): K shifted sublane reads of the resident tile.
    # TODO(synk): for very long sequences also tile the seq axis (K-1 halo).
    for k in range(kernel_size):
        acc = acc + (
            xp_ref[k : k + seq_len, :].astype(jnp.float32)
            * w_ref[k : k + 1, :].astype(jnp.float32)
        )
    acc = acc + b_ref[...].astype(jnp.float32)
    o_ref[...] = _silu(acc).astype(o_ref.dtype)


def pallas_causal_conv_silu(x, w_kc, bias, *, out_dtype):
    B, S, C = x.shape
    K = w_kc.shape[0]
    tc = _pick_tile(C, 512, 128)
    xp = jnp.pad(x, ((0, 0), (K - 1, 0), (0, 0)))  # causal left pad
    kern = functools.partial(_conv_silu_kernel, kernel_size=K, seq_len=S)
    return pl.pallas_call(
        kern,
        grid=(B, C // tc),
        out_shape=jax.ShapeDtypeStruct((B, S, C), out_dtype),
        in_specs=[
            pl.BlockSpec((None, S + K - 1, tc), lambda b, c: (b, 0, c)),
            pl.BlockSpec((K, tc), lambda b, c: (0, c)),
            pl.BlockSpec((1, tc), lambda b, c: (0, c)),
        ],
        out_specs=pl.BlockSpec((None, S, tc), lambda b, c: (b, 0, c)),
        compiler_params=pltpu.CompilerParams(
            dimension_semantics=("parallel", "parallel")),
    )(xp, w_kc, bias.reshape(1, C))


# ---------------- kernel 3: SSD chunked scan ----------------
def _broadcast_groups_to_heads(t, num_heads):
    """(cs, G, N) -> (NH, cs, N); head h reads group h % G (matches torch .repeat)."""
    cs, G, N = t.shape
    if G == 1:
        return jnp.broadcast_to(t[:, 0, :][None], (num_heads, cs, N))
    reps = num_heads // G
    t_g = pltpu.einshape("kgn->gkn", t)  # (G, cs, N)
    if reps == 1:
        return t_g
    return jnp.broadcast_to(t_g[None], (reps, G, cs, N)).reshape(num_heads, cs, N)


def _ssd_kernel(
    x_ref, B_ref, C_ref, dt_ref, alog_ref, dtb_ref, d_ref, y_ref, state_ref, *,
    seq_len, chunk_size, num_heads, head_dim, state_size, n_groups,
    dt_min, dt_max, head_block,
):
    cs, NH = chunk_size, num_heads
    c = pl.program_id(1)

    # per-head SSM state lives in VMEM scratch, carried across the chunk grid axis
    @pl.when(c == 0)
    def _():
        state_ref[...] = jnp.zeros_like(state_ref)

    x3 = x_ref[...].astype(jnp.float32)          # (cs, NH, P)
    Bg = B_ref[...].astype(jnp.float32)          # (cs, G, N)
    Cg = C_ref[...].astype(jnp.float32)          # (cs, G, N)
    dt_raw = dt_ref[...].astype(jnp.float32)     # (cs, NH)

    A_col = -jnp.exp(alog_ref[...].astype(jnp.float32))   # (NH, 1)
    dtb_col = dtb_ref[...].astype(jnp.float32)             # (NH, 1)
    d_col = d_ref[...].astype(jnp.float32)                 # (NH, 1)

    # --- dt / decay math, head-major (NH, cs): all heads at once ---
    dt_t = jnp.transpose(dt_raw)                 # (NH, cs)
    z = dt_t + dtb_col
    dt_t = jnp.maximum(z, 0.0) + jnp.log(1.0 + jnp.exp(-jnp.abs(z)))  # softplus
    dt_t = jnp.clip(dt_t, dt_min, dt_max)
    # zero padded tail (matches torch's zero padding of A*dt and x*dt)
    pos = c * cs + lax.broadcasted_iota(jnp.int32, (NH, cs), 1)
    dt_t = jnp.where(pos < seq_len, dt_t, 0.0)

    A_dt = A_col * dt_t                          # (NH, cs)

    row = lax.broadcasted_iota(jnp.int32, (cs, cs), 0)
    col = lax.broadcasted_iota(jnp.int32, (cs, cs), 1)
    cumsum_op = (row <= col).astype(jnp.float32)  # [l, k] = 1 if l <= k
    ltri_mask = col <= row                        # [k, l] = l <= k

    a_cs = jnp.dot(A_dt, cumsum_op, preferred_element_type=jnp.float32)  # (NH, cs)
    a_last = a_cs[:, cs - 1 : cs]                 # (NH, 1)
    decay_states = jnp.exp(a_last - a_cs)         # (NH, cs)
    decay_out = jnp.exp(a_cs)                     # (NH, cs)
    state_gain = jnp.exp(a_last)                  # (NH, 1)

    # grouped B/C broadcast to heads in-register (no NH/G HBM tiling)
    Bh = _broadcast_groups_to_heads(Bg, NH)       # (NH, cs, N)
    Ch = _broadcast_groups_to_heads(Cg, NH)       # (NH, cs, N)

    x_t = pltpu.einshape("khp->hkp", x3)          # (NH, cs, P)
    xdt = x_t * dt_t[:, :, None]                  # (NH, cs, P)

    prev_state = state_ref[...]                   # (NH, P, N)  (state before this chunk)

    for h0 in range(0, NH, head_block):
        h1 = h0 + head_block
        xs = x_t[h0:h1]
        xd = xdt[h0:h1]
        Bs = Bh[h0:h1]
        Cs = Ch[h0:h1]
        acs = a_cs[h0:h1]
        dcs = decay_states[h0:h1]
        dco = decay_out[h0:h1]
        prev = prev_state[h0:h1]

        # L[h,k,l] = exp(sum_{i=l+1..k} A_dt[h,i]) on the lower triangle, else 0
        seg = acs[:, :, None] - acs[:, None, :]
        L = jnp.exp(jnp.where(ltri_mask[None], seg, -jnp.inf))

        # intra-chunk ("diagonal") term: head-batched MXU matmuls
        Gm = jnp.einsum("hkn,hln->hkl", Cs, Bs, preferred_element_type=jnp.float32)
        y_hb = jnp.einsum("hkl,hlp->hkp", Gm * L, xd, preferred_element_type=jnp.float32)

        # inter-chunk ("off-diagonal") term from the carried state
        y_hb = y_hb + dco[:, :, None] * jnp.einsum(
            "hkn,hpn->hkp", Cs, prev, preferred_element_type=jnp.float32)

        # D residual on the pre-dt hidden states
        y_hb = y_hb + d_col[h0:h1][:, :, None] * xs

        # carried-state update: state <- exp(a_last) * state + x_dt^T (B * decay)
        # TODO(synk): fold into one head-batched dot once Mosaic supports these dnums.
        Bdec = Bs * dcs[:, :, None]               # (hb, cs, N)
        for i in range(h1 - h0):
            h = h0 + i
            new_s = jnp.dot(jnp.transpose(xd[i]), Bdec[i],
                            preferred_element_type=jnp.float32)   # (P, N)
            state_ref[h] = state_gain[h : h + 1, :] * prev[i] + new_s

        # single seq-major slab store per head block (no per-head strided stores)
        y_ref[:, h0:h1, :] = pltpu.einshape("hkp->khp", y_hb).astype(y_ref.dtype)


def pallas_ssd(x, Bm, Cm, dt, A_log, dt_bias, D, *, seq_len, chunk_size, n_groups, dt_limit):
    B, s_pad, NH, P = x.shape
    N = Bm.shape[-1]
    NC = s_pad // chunk_size
    HB = _pick_head_block(NH, chunk_size)
    kern = functools.partial(
        _ssd_kernel,
        seq_len=seq_len, chunk_size=chunk_size, num_heads=NH, head_dim=P,
        state_size=N, n_groups=n_groups,
        dt_min=float(dt_limit[0]), dt_max=float(dt_limit[1]), head_block=HB,
    )
    return pl.pallas_call(
        kern,
        grid=(B, NC),
        out_shape=jax.ShapeDtypeStruct((B, s_pad, NH, P), jnp.float32),
        in_specs=[
            pl.BlockSpec((None, chunk_size, NH, P), lambda b, c: (b, c, 0, 0)),
            pl.BlockSpec((None, chunk_size, n_groups, N), lambda b, c: (b, c, 0, 0)),
            pl.BlockSpec((None, chunk_size, n_groups, N), lambda b, c: (b, c, 0, 0)),
            pl.BlockSpec((None, chunk_size, NH), lambda b, c: (b, c, 0)),
            pl.BlockSpec((NH, 1), lambda b, c: (0, 0)),
            pl.BlockSpec((NH, 1), lambda b, c: (0, 0)),
            pl.BlockSpec((NH, 1), lambda b, c: (0, 0)),
        ],
        out_specs=pl.BlockSpec((None, chunk_size, NH, P), lambda b, c: (b, c, 0, 0)),
        scratch_shapes=[pltpu.VMEM((NH, P, N), jnp.float32)],
        compiler_params=pltpu.CompilerParams(
            dimension_semantics=("parallel", "arbitrary")),
    )(
        x, Bm, Cm, dt,
        A_log.reshape(NH, 1).astype(jnp.float32),
        dt_bias.reshape(NH, 1).astype(jnp.float32),
        D.reshape(NH, 1).astype(jnp.float32),
    )


# ---------------- kernel 4: silu-gated RMSNorm + out_proj ----------------
def _gated_rmsnorm_outproj_kernel(y_ref, g_ref, nw_ref, wo_ref, bo_ref, o_ref, *, eps):
    y = y_ref[...].astype(jnp.float32)
    g = g_ref[...].astype(jnp.float32)
    h = y * _silu(g)
    var = jnp.mean(h * h, axis=-1, keepdims=True)
    h = h * lax.rsqrt(var + eps) * nw_ref[...].astype(jnp.float32)
    o_ref[...] = (
        jnp.dot(h.astype(wo_ref.dtype), wo_ref[...], preferred_element_type=jnp.float32)
        + bo_ref[...].astype(jnp.float32)
    ).astype(o_ref.dtype)


def pallas_gated_rmsnorm_outproj(y, gate, norm_w, w_out, b_out, eps, *, out_dtype, tm=256):
    M, I = y.shape
    H = w_out.shape[1]
    tm = _pick_tile(M, tm, 8)
    # TODO(synk): also tile the I/H axes of out_proj when I*H no longer fits VMEM.
    kern = functools.partial(_gated_rmsnorm_outproj_kernel, eps=eps)
    return pl.pallas_call(
        kern,
        grid=(M // tm,),
        out_shape=jax.ShapeDtypeStruct((M, H), out_dtype),
        in_specs=[
            pl.BlockSpec((tm, I), lambda i: (i, 0)),
            pl.BlockSpec((tm, I), lambda i: (i, 0)),
            pl.BlockSpec((1, I), lambda i: (0, 0)),
            pl.BlockSpec((I, H), lambda i: (0, 0)),
            pl.BlockSpec((1, H), lambda i: (0, 0)),
        ],
        out_specs=pl.BlockSpec((tm, H), lambda i: (i, 0)),
        compiler_params=pltpu.CompilerParams(dimension_semantics=("parallel",)),
    )(y, gate, norm_w.reshape(1, I), w_out, b_out.reshape(1, H))


# ---------------- full forward (glue) ----------------
def mamba2_forward(hidden_states, params, cfg):
    B, S, H = hidden_states.shape
    io_dtype = hidden_states.dtype
    I = cfg["intermediate_size"]
    NH = cfg["num_heads"]
    N = cfg["state_size"]
    G = cfg["n_groups"]
    CS = cfg["chunk_size"]
    P = I // NH
    conv_dim = I + 2 * G * N

    # 1) in_proj and split into (gate, hidden_states_B_C, dt)
    # TODO(synk): emit the three splits as separate lane-dense kernel outputs to
    # avoid the wrapper-side slice copies.
    proj = pallas_linear(
        hidden_states.reshape(B * S, H), params["w_in"], params["b_in"],
        out_dtype=io_dtype,
    ).reshape(B, S, -1)
    gate = proj[..., :I]
    hbc = proj[..., I : I + conv_dim]
    dt = proj[..., I + conv_dim :]

    # 2) depthwise causal conv + SiLU
    hbc = pallas_causal_conv_silu(hbc, params["conv_w"], params["conv_b"],
                                  out_dtype=io_dtype)

    # 3) SSD chunked scan
    xh = hbc[..., :I]
    Bm = hbc[..., I : I + G * N]
    Cm = hbc[..., I + G * N :]

    pad = (CS - S % CS) % CS
    s_pad = S + pad
    if pad:
        xh = jnp.pad(xh, ((0, 0), (0, pad), (0, 0)))
        Bm = jnp.pad(Bm, ((0, 0), (0, pad), (0, 0)))
        Cm = jnp.pad(Cm, ((0, 0), (0, pad), (0, 0)))
        dt = jnp.pad(dt, ((0, 0), (0, pad), (0, 0)))

    y = pallas_ssd(
        xh.reshape(B, s_pad, NH, P),
        Bm.reshape(B, s_pad, G, N),
        Cm.reshape(B, s_pad, G, N),
        dt,
        params["A_log"], params["dt_bias"], params["D"],
        seq_len=S, chunk_size=CS, n_groups=G, dt_limit=cfg["time_step_limit"],
    )
    # output is already seq-major / feature-contiguous: reshape is free, just drop pad
    y = y.reshape(B, s_pad, I)[:, :S]

    # 4) silu-gated RMSNorm + out_proj (output emitted in the model dtype)
    out = pallas_gated_rmsnorm_outproj(
        y.reshape(B * S, I), gate.reshape(B * S, I),
        params["norm_w"], params["w_out"], params["b_out"],
        cfg["layer_norm_epsilon"], out_dtype=io_dtype,
    )
    return out.reshape(B, S, H)


def init_params(key, cfg):
    H = cfg["hidden_size"]
    I = cfg["intermediate_size"]
    NH = cfg["num_heads"]
    N = cfg["state_size"]
    G = cfg["n_groups"]
    K = cfg["conv_kernel"]
    num_layers = cfg["num_layers"]
    conv_dim = I + 2 * G * N
    d_in = I + conv_dim + NH
    std = cfg["initializer_range"]

    k1, k2, k3, k4 = jax.random.split(key, 4)
    return {
        "w_in": jax.random.normal(k1, (H, d_in), jnp.float32) * std,
        "b_in": jnp.zeros((d_in,), jnp.float32),  # add_bias = False
        "conv_w": jax.random.normal(k2, (K, conv_dim), jnp.float32) * 0.1,  # (K, C)
        "conv_b": jax.random.normal(k3, (conv_dim,), jnp.float32) * 0.01,   # use_conv_bias
        "dt_bias": jnp.ones((NH,), jnp.float32),
        "A_log": jnp.log(jnp.arange(1, NH + 1, dtype=jnp.float32)),
        "D": jnp.ones((NH,), jnp.float32),
        "norm_w": jnp.ones((I,), jnp.float32),
        "w_out": jax.random.normal(k4, (I, H), jnp.float32)
        * (std / math.sqrt(2 * num_layers)),
        "b_out": jnp.zeros((H,), jnp.float32),
    }


if __name__ == "__main__":
    cfg = dict(
        hidden_size=32,
        intermediate_size=32,
        num_heads=4,          # head_dim = 8
        state_size=16,
        n_groups=1,
        conv_kernel=4,
        chunk_size=8,
        time_step_limit=(0.0, float("inf")),
        layer_norm_epsilon=1e-5,
        initializer_range=0.02,
        num_layers=2,
    )
    key = jax.random.PRNGKey(0)
    kp, kx = jax.random.split(key)
    params = init_params(kp, cfg)

    batch, seq = 2, 16
    hidden_states = jax.random.normal(kx, (batch, seq, cfg["hidden_size"]), jnp.float32)

    out = mamba2_forward(hidden_states, params, cfg)
    out = jax.block_until_ready(out)

    assert out.shape == (batch, seq, cfg["hidden_size"])
    assert bool(jnp.all(jnp.isfinite(out)))
    print("KERNEL_OK")
</pallas_src>

<mosaic_0001>
module attributes {stable_mosaic.version = 11 : i64} {
  func.func @_matmul_bias_kernel(%arg0: i32, %arg1: i32, %arg2: i32, %arg3: memref<32x32xf32, #tpu.memory_space<vmem>>, %arg4: memref<32x100xf32, #tpu.memory_space<vmem>>, %arg5: memref<1x100xf32, #tpu.memory_space<vmem>>, %arg6: memref<32x100xf32, #tpu.memory_space<vmem>>, %arg7: memref<32x100xf32, #tpu.memory_space<vmem>>) attributes {dimension_semantics = [#tpu.dimension_semantics<parallel>, #tpu.dimension_semantics<parallel>, #tpu.dimension_semantics<arbitrary>], iteration_bounds = array<i64: 1, 1, 1>, scalar_prefetch = 0 : i64, scratch_operands = 1 : i64, tpu.core_type = #tpu.core_type<tc>, window_params = [{transform_indices = @transform_0, window_bounds = array<i64: 32, 32>}, {transform_indices = @transform_1, window_bounds = array<i64: 32, 100>}, {transform_indices = @transform_2, window_bounds = array<i64: 1, 100>}, {transform_indices = @transform_3, window_bounds = array<i64: 32, 100>}]} {
    %c0_i32 = arith.constant 0 : i32
    %0 = arith.cmpi eq, %arg2, %c0_i32 : i32
    %1 = arith.extui %0 : i1 to i32
    %c0_i32_0 = arith.constant 0 : i32
    %2 = arith.cmpi ne, %1, %c0_i32_0 : i32
    scf.if %2 {
      %cst_10 = arith.constant 0.000000e+00 : f32
      %12 = vector.broadcast %cst_10 : f32 to vector<32x100xf32>
      %c0_11 = arith.constant 0 : index
      %c0_12 = arith.constant 0 : index
      %13 = vector.load %arg7[%c0_11, %c0_12] : memref<32x100xf32, #tpu.memory_space<vmem>>, vector<32x100xf32>
      tpu.vector_store %arg7[%c0_11, %c0_12], %12 {strides = array<i32>} : memref<32x100xf32, #tpu.memory_space<vmem>>, vector<32x100xf32>,
    } else {
    }
    %c0 = arith.constant 0 : index
    %c0_1 = arith.constant 0 : index
    %3 = vector.load %arg7[%c0, %c0_1] : memref<32x100xf32, #tpu.memory_space<vmem>>, vector<32x100xf32>
    %c0_2 = arith.constant 0 : index
    %c0_3 = arith.constant 0 : index
    %4 = vector.load %arg3[%c0_2, %c0_3] : memref<32x32xf32, #tpu.memory_space<vmem>>, vector<32x32xf32>
    %c0_4 = arith.constant 0 : index
    %c0_5 = arith.constant 0 : index
    %5 = vector.load %arg4[%c0_4, %c0_5] : memref<32x100xf32, #tpu.memory_space<vmem>>, vector<32x100xf32>
    %cst = arith.constant dense<0.000000e+00> : vector<32x100xf32>
    %6 = tpu.matmul %4, %5, %cst {dimension_numbers = #tpu.dot_dimension_numbers<[1], [0], [0], [1], [0, 0, 1, 1], [], []>} : vector<32x32xf32>, vector<32x100xf32>, vector<32x100xf32> -> vector<32x100xf32>
    %7 = arith.addf %3, %6 : vector<32x100xf32>
    %c0_6 = arith.constant 0 : index
    %c0_7 = arith.constant 0 : index
    %8 = vector.load %arg7[%c0_6, %c0_7] : memref<32x100xf32, #tpu.memory_space<vmem>>, vector<32x100xf32>
    tpu.vector_store %arg7[%c0_6, %c0_7], %7 {strides = array<i32>} : memref<32x100xf32, #tpu.memory_space<vmem>>, vector<32x100xf32>,
    %c0_i32_8 = arith.constant 0 : i32
    %9 = arith.cmpi eq, %arg2, %c0_i32_8 : i32
    %10 = arith.extui %9 : i1 to i32
    %c0_i32_9 = arith.constant 0 : i32
    %11 = arith.cmpi ne, %10, %c0_i32_9 : i32
    scf.if %11 {
      %c0_10 = arith.constant 0 : index
      %c0_11 = arith.constant 0 : index
      %12 = vector.load %arg7[%c0_10, %c0_11] : memref<32x100xf32, #tpu.memory_space<vmem>>, vector<32x100xf32>
      %c0_12 = arith.constant 0 : index
      %c0_13 = arith.constant 0 : index
      %13 = vector.load %arg5[%c0_12, %c0_13] : memref<1x100xf32, #tpu.memory_space<vmem>>, vector<1x100xf32>
      %14 = vector.broadcast %13 : vector<1x100xf32> to vector<32x100xf32>
      %15 = arith.addf %12, %14 : vector<32x100xf32>
      %c0_14 = arith.constant 0 : index
      %c0_15 = arith.constant 0 : index
      %16 = vector.load %arg6[%c0_14, %c0_15] : memref<32x100xf32, #tpu.memory_space<vmem>>, vector<32x100xf32>
      tpu.vector_store %arg6[%c0_14, %c0_15], %15 {strides = array<i32>} : memref<32x100xf32, #tpu.memory_space<vmem>>, vector<32x100xf32>,
    } else {
    }
    return
  }
  func.func @transform_0(%arg0: i32, %arg1: i32, %arg2: i32) -> (i32, i32) {
    %c0_i32 = arith.constant 0 : i32
    return %arg0, %arg2 : i32, i32
  }
  func.func @transform_1(%arg0: i32, %arg1: i32, %arg2: i32) -> (i32, i32) {
    %c0_i32 = arith.constant 0 : i32
    return %arg2, %arg1 : i32, i32
  }
  func.func @transform_2(%arg0: i32, %arg1: i32, %arg2: i32) -> (i32, i32) {
    %c0_i32 = arith.constant 0 : i32
    %c0_i32_0 = arith.constant 0 : i32
    return %c0_i32, %arg1 : i32, i32
  }
  func.func @transform_3(%arg0: i32, %arg1: i32, %arg2: i32) -> (i32, i32) {
    %c0_i32 = arith.constant 0 : i32
    return %arg0, %arg1 : i32, i32
  }
}

</mosaic_0001>

<bundles_post_ra>
// kernel: tpu_custom_call.1
= control target key start
LH: loop header
LB: loop body
LE: loop exit
PB: predicated region body
PF: predicated region fallthrough
CT: control target
= control target key end

     0   :  { %8 = vsyncpa [#allocation4], 0  ;;  %s318_s0 = inlined_call_operand.hbm [shape: f32[32,32], index: 0, kind: input, shape index: {}]   ;;  %s319_s1 = inlined_call_operand.hbm [shape: f32[32,100], index: 1, kind: input, shape index: {}]   ;;  %s320_s2 = inlined_call_operand.vmem [shape: f32[1,100], index: 2, kind: input, shape index: {}]   ;;  %s321_s3 = inlined_call_operand.hbm [shape: f32[32,100], index: 3, kind: output, shape index: {}]  }
   0x1   :  { %9 = vsyncpa [#allocation7], 0 }
   0x2   :  { %10 = vsyncpa [#allocation5], 0  ;;  %s15_s14 = sshll.u32 %s318_s0, 4  ;;  %s259_s15 = smov [#allocation3]   ;;  %s16_s14 = int_to_ptr.hbm [resolvable:$true] %s15_s14 }
   0x3   :  { %s17_s16 = sshll.u32 %s259_s15, 4  ;;  %s28_s19 = sshll.u32 %s319_s1, 4  ;;  %s18_s16 = int_to_ptr.vmem [resolvable:$true] %s17_s16  ;;  %s29_s19 = int_to_ptr.hbm [resolvable:$true] %s28_s19 }
   0x4   :  { %s260_s20 = smov 128   ;;  %s261_s21 = smov 8  }
   0x5   :  { %23 = dma.hbm_to_vmem [thread:$0]  %s16_s14, 512, %s18_s16, [#allocation4], %s260_s20, %s260_s20, %s261_s21  }
   0x6   :  { %s262_s22 = smov [#allocation6]  }
   0x7   :  { %s30_s23 = sshll.u32 %s262_s22, 4  ;;  %s31_s23 = int_to_ptr.vmem [resolvable:$true] %s30_s23 }
   0x8   :  { %36 = dma.hbm_to_vmem [thread:$0]  %s29_s19, 512, %s31_s23, [#allocation7], %s260_s20, %s260_s20, %s261_s21  }
   0x9   :  { %253 = dma.done.wait [#allocation4], 512  }
   0xa   :  { %254 = vsyncadd [#allocation4], 4294966784 }
   0xb   :  { %255 = dma.done.wait [#allocation7], 512  }
   0xc   :  { %256 = vsyncadd [#allocation7], 4294966784  ;;  %vm51_vm0 = vcmask 818176   ;;  %v263_v0 = vmov 0.0   ;;  %v67_v1 = vld [vmem:[#allocation6 + $0x18] sm:$0xff]  ;;  %v66_v2 = vld [vmem:[#allocation6 + $0x10] sm:$0xff] }
   0xd   :  { %52 = vst.msk [vmem:[#allocation2] sm:$0xff] %vm51_vm0, %v263_v0  ;;  %163 = vmatpush.msra.mxu2 %v67_v1  ;;  %164 = vmatpush.msra.mxu3 %v67_v1  ;;  %v65_v3 = vld [vmem:[#allocation6 + $0x8] sm:$0xff]  ;;  %v64_v4 = vld [vmem:[#allocation6] sm:$0xff]  ;;  %v62_v5 = vld [vmem:[#allocation3 + $0x10] sm:$0xff]  ;;  %vm68_vm1 = vcmask 261120   ;;  %s264_s24 = smov [#allocation8]  }
   0xe   :  { %53 = vst.msk [vmem:[#allocation2 + $0x8] sm:$0xff] %vm51_vm0, %v263_v0  ;;  %93 = vmatpush.msra.mxu0 %v67_v1  ;;  %162 = vmatpush.msra.mxu1 %v67_v1  ;;  %v63_v6 = vld [vmem:[#allocation3 + $0x18] sm:$0xff]  ;;  %v60_v7 = vld [vmem:[#allocation3] sm:$0xff]  ;;  %v61_v8 = vld [vmem:[#allocation3 + $0x8] sm:$0xff]  ;;  %s142_s25 = sshll.u32 %s264_s24, 4  ;;  %s144_s28 = sshll.u32 %s321_s3, 4  ;;  %s143_s25 = int_to_ptr.vmem [resolvable:$true] %s142_s25  ;;  %s145_s28 = int_to_ptr.hbm [resolvable:$true] %s144_s28 }
   0xf   :  { %54 = vst.msk [vmem:[#allocation2 + $0x10] sm:$0xff] %vm51_vm0, %v263_v0  ;;  %166 = vmatpush.msra.mxu2 %v66_v2  ;;  %167 = vmatpush.msra.mxu3 %v66_v2  ;;  %v180_v21 = vld [vmem:[%s320_s2] ss:$0 sm:$0xff] }
  0x10   :  { %55 = vst.msk [vmem:[#allocation2 + $0x18] sm:$0xff] %vm51_vm0, %v263_v0  ;;  %94 = vmatpush.msra.mxu0 %v66_v2  ;;  %165 = vmatpush.msra.mxu1 %v66_v2 }
  0x11   :  { %169 = vmatpush.msra.mxu2 %v65_v3  ;;  %170 = vmatpush.msra.mxu3 %v65_v3 }
  0x12   :  { %95 = vmatpush.msra.mxu0 %v65_v3  ;;  %168 = vmatpush.msra.mxu1 %v65_v3 }
  0x13   :  { %172 = vmatpush.msra.mxu2 %v64_v4  ;;  %173 = vmatpush.msra.mxu3 %v64_v4 }
  0x14   :  { %160 = vmatmul.msk.f32.vlgmr.msra.gmra.mxu2 %vm68_vm1, %v62_v5  ;;  %161 = vmatmul.msk.f32.vlgmr.msra.gmra.mxu3 %vm68_vm1, %v63_v6  ;;  %v56_v9 = vld [vmem:[#allocation2] sm:$0xff] }
  0x15   :  { %96 = vmatpush.msra.mxu0 %v64_v4  ;;  %171 = vmatpush.msra.mxu1 %v64_v4  ;;  %v57_v10 = vld [vmem:[#allocation2 + $0x8] sm:$0xff] }
  0x16   :  { %158 = vmatmul.msk.f32.vlgmr.msra.gmra.mxu0 %vm68_vm1, %v60_v7  ;;  %159 = vmatmul.msk.f32.vlgmr.msra.gmra.mxu1 %vm68_vm1, %v61_v8  ;;  %v58_v15 = vld [vmem:[#allocation2 + $0x10] sm:$0xff] }
  0x17   :  { %v59_v16 = vld [vmem:[#allocation2 + $0x18] sm:$0xff] }
  0x93   :  { %v98_v11 = vpop.f32.mrf.mxu0  ;;  %v101_v12 = vpop.f32.mrf.mxu1 }
  0x94   :  { %v110_v13 = vadd.f32 %v98_v11, %v56_v9  ;;  %v111_v14 = vadd.f32 %v101_v12, %v57_v10 }
  0x96   :  { %115 = vst.msk [vmem:[#allocation2] sm:$0xff] %vm51_vm0, %v110_v13 }
  0x97   :  { %116 = vst.msk [vmem:[#allocation2 + $0x8] sm:$0xff] %vm51_vm0, %v111_v14  ;;  %v104_v17 = vpop.f32.mrf.mxu2  ;;  %v107_v18 = vpop.f32.mrf.mxu3 }
  0x98   :  { %v112_v19 = vadd.f32 %v104_v17, %v58_v15  ;;  %v113_v20 = vadd.f32 %v107_v18, %v59_v16 }
  0x9a   :  { %117 = vst.msk [vmem:[#allocation2 + $0x10] sm:$0xff] %vm51_vm0, %v112_v19 }
  0x9b   :  { %118 = vst.msk [vmem:[#allocation2 + $0x18] sm:$0xff] %vm51_vm0, %v113_v20 }
  0x9d   :  { %v122_v22 = vld [vmem:[#allocation2] sm:$0xff] }
  0x9e   :  { %v123_v23 = vld [vmem:[#allocation2 + $0x8] sm:$0xff]  ;;  %v130_v24 = vadd.f32 %v180_v21, %v122_v22 }
  0x9f   :  { %v131_v25 = vadd.f32 %v180_v21, %v123_v23 }
  0xa0   :  { %134 = vst.msk [vmem:[#allocation8] sm:$0xff] %vm51_vm0, %v130_v24 }
  0xa1   :  { %v124_v26 = vld [vmem:[#allocation2 + $0x10] sm:$0xff]  ;;  %135 = vst.msk [vmem:[#allocation8 + $0x8] sm:$0xff] %vm51_vm0, %v131_v25 }
  0xa2   :  { %v125_v27 = vld [vmem:[#allocation2 + $0x18] sm:$0xff]  ;;  %v132_v28 = vadd.f32 %v180_v21, %v124_v26 }
  0xa3   :  { %v133_v29 = vadd.f32 %v180_v21, %v125_v27 }
  0xa4   :  { %136 = vst.msk [vmem:[#allocation8 + $0x10] sm:$0xff] %vm51_vm0, %v132_v28 }
  0xa5   :  { %137 = vst.msk [vmem:[#allocation8 + $0x18] sm:$0xff] %vm51_vm0, %v133_v29 }
  0xa6   :  { %150 = dma.vmem_to_hbm [thread:$0]  %s143_s25, 512, %s145_s28, [#allocation5], %s260_s20, %s260_s20, %s261_s21  }
  0xa7   :  { %257 = dma.done.wait [#allocation5], 512  }
  0xa8   :  { %258 = vsyncadd [#allocation5], 4294966784 }
  0xa9   :  { %155 = vsyncpa [#allocation4], 1 }
  0xaa   :  { %156 = vsyncpa [#allocation7], 1 }
  0xab   :  { %157 = vsyncpa [#allocation5], 1 }

</bundles_post_ra>
